<compile_context>
chip_gen: v6e
topology: v6e:2x2x1
jax: 0.10.0
libtpu: 0.0.40
codegen_flags: <defaults>
</compile_context>

<pallas_src>
import functools

import jax
import jax.numpy as jnp
from jax import lax
from jax.experimental import pallas as pl
from jax.experimental.pallas import tpu as pltpu


def _lstm_kernel(x_ref, w_ih_ref, w_hh_ref, b_ref, w_fc_ref, b_fc_ref,
                 out_ref, *, hidden_size, seq_len, batch):
    """LSTM recurrence + FC head, everything resident in VMEM (one invocation).

    x_ref   : (B, T, 1)  f32   raw batch-first input (I == 1)
    w_ih_ref: (1, 4H)    f32   weight_ih_l0^T, i/f/o columns pre-scaled by 0.5
    w_hh_ref: (H, 4H)    f32   weight_hh_l0^T, i/f/o columns pre-scaled by 0.5
    b_ref   : (1, 4H)    f32   (bias_ih + bias_hh), i/f/o columns pre-scaled
    w_fc_ref: (1, H)     f32   fc.weight (C == 1)
    b_fc_ref: (1, 1)     f32   fc.bias
    out_ref : (B, 1)     f32
    """
    H = hidden_size
    T = seq_len
    B = batch

    x = x_ref[...]                               # (B, T, 1)
    w_ih = w_ih_ref[...]                         # (1, 4H)
    w_hh = w_hh_ref[...]                         # (H, 4H), loop-invariant
    b = b_ref[...]                               # (1, 4H)

    h = jnp.zeros((B, H), jnp.float32)
    c = jnp.zeros((B, H), jnp.float32)

    # Statically unrolled serial recurrence: one MXU push per step (t >= 1).
    for t in range(T):
        # Input projection: I == 1 -> VPU broadcast outer product, not a K=1
        # MXU matmul.  Independent of h, so off the serial critical path.
        xp_t = x[:, t, :] * w_ih + b             # (B, 1) * (1, 4H) -> (B, 4H)
        if t == 0:
            gates = xp_t                         # h == 0 at t=0: skip dead dot
        else:
            gates = jnp.dot(h, w_hh,
                            preferred_element_type=jnp.float32) + xp_t
        # Single EUP pass over the full 4H-wide gates vreg.  The i/f/o gate
        # columns of the weights/bias were pre-scaled by 0.5, so for those
        # lanes tanh(gates) == tanh(z/2) and 0.5*(y + 1) == sigmoid(z); the
        # g lanes were left unscaled and give plain tanh(z).
        y = jnp.tanh(gates)
        i_g = 0.5 * (y[:, 0 * H:1 * H] + 1.0)
        f_g = 0.5 * (y[:, 1 * H:2 * H] + 1.0)
        g_g = y[:, 2 * H:3 * H]
        o_g = 0.5 * (y[:, 3 * H:4 * H] + 1.0)
        c = f_g * c + i_g * g_g
        h = o_g * jnp.tanh(c)

    # FC head (C == 1): VPU multiply + cross-lane (XLU) reduce instead of an
    # N=1 MXU dot that would drain a single MXU column.
    out_ref[...] = (jnp.sum(h * w_fc_ref[...], axis=-1, keepdims=True)
                    + b_fc_ref[...])


def prepare_params(w_ih, w_hh, b_ih, b_hh, w_fc, b_fc):
    """One-time weight preprocessing (kept OUT of the per-call hot path).

    Transposes to (in, 4H) layout, folds the two biases together, and
    pre-scales the i/f/o gate columns by 0.5 so the kernel can use the
    sigmoid(z) = 0.5*(1 + tanh(z/2)) identity with a single tanh per step.
    Assumes num_classes == 1 (as in the PyTorch module).
    """
    four_h = w_ih.shape[0]
    H = four_h // 4
    assert w_fc.shape[0] == 1, "kernel FC path assumes num_classes == 1"

    # Gate order along 4H: i, f, g, o.  Sigmoid gates (i, f, o) get 0.5.
    scale = jnp.concatenate([
        jnp.full((H,), 0.5), jnp.full((H,), 0.5),
        jnp.ones((H,)), jnp.full((H,), 0.5),
    ]).astype(jnp.float32)

    w_ih_t = jnp.transpose(w_ih).astype(jnp.float32) * scale[None, :]   # (I, 4H)
    w_hh_t = jnp.transpose(w_hh).astype(jnp.float32) * scale[None, :]   # (H, 4H)
    b = ((b_ih + b_hh).astype(jnp.float32) * scale).reshape(1, four_h)  # (1, 4H)
    w_fc_r = w_fc.astype(jnp.float32).reshape(1, H)                     # (1, H)
    b_fc_r = b_fc.astype(jnp.float32).reshape(1, 1)                     # (1, 1)
    return w_ih_t, w_hh_t, b, w_fc_r, b_fc_r


@jax.jit
def lstm_forward(x, w_ih_t, w_hh_t, b, w_fc_r, b_fc_r):
    """x: (B, T, 1) batch-first, as in the PyTorch module. Returns (B, 1)."""
    B, T, I = x.shape
    assert I == 1, "kernel input-projection path assumes input_size == 1"
    H = w_hh_t.shape[0]
    C = b_fc_r.shape[1]

    kernel = functools.partial(_lstm_kernel,
                               hidden_size=H, seq_len=T, batch=B)
    vmem_spec = pl.BlockSpec(memory_space=pltpu.MemorySpace.VMEM)
    # No grid: total footprint is a few KiB, far below VMEM on v5e/v6e/v7x.
    # If B grows, add a leading "parallel" batch grid axis (keep T inside the
    # body) so v7x's two TensorCores both get work.
    return pl.pallas_call(
        kernel,
        out_shape=jax.ShapeDtypeStruct((B, C), jnp.float32),
        in_specs=[vmem_spec] * 6,
        out_specs=vmem_spec,
    )(x.astype(jnp.float32), w_ih_t, w_hh_t, b, w_fc_r, b_fc_r)


def lstm_reference(x, w_ih, w_hh, b_ih, b_hh, w_fc, b_fc):
    """Pure-JAX reference matching torch.nn.LSTM + Linear semantics."""
    B, T, I = x.shape
    H = w_hh.shape[1]

    def step(carry, x_t):
        h, c = carry
        gates = x_t @ w_ih.T + b_ih + h @ w_hh.T + b_hh
        i_g = jax.nn.sigmoid(gates[:, 0 * H:1 * H])
        f_g = jax.nn.sigmoid(gates[:, 1 * H:2 * H])
        g_g = jnp.tanh(gates[:, 2 * H:3 * H])
        o_g = jax.nn.sigmoid(gates[:, 3 * H:4 * H])
        c = f_g * c + i_g * g_g
        h = o_g * jnp.tanh(c)
        return (h, c), None

    h0 = jnp.zeros((B, H), jnp.float32)
    c0 = jnp.zeros((B, H), jnp.float32)
    (h_final, _), _ = lax.scan(step, (h0, c0), jnp.transpose(x, (1, 0, 2)))
    return h_final @ w_fc.T + b_fc


if __name__ == "__main__":
    # Module hyperparameters implied by the PyTorch script.
    batch = 2
    seq_length = 8       # look_back
    input_size = 1
    hidden_size = 32
    num_classes = 1

    key = jax.random.PRNGKey(0)
    ks = jax.random.split(key, 7)
    bound = 1.0 / jnp.sqrt(hidden_size)   # PyTorch default uniform init scale

    x = jax.random.normal(ks[0], (batch, seq_length, input_size), jnp.float32)
    w_ih = jax.random.uniform(ks[1], (4 * hidden_size, input_size),
                              jnp.float32, -bound, bound)
    w_hh = jax.random.uniform(ks[2], (4 * hidden_size, hidden_size),
                              jnp.float32, -bound, bound)
    b_ih = jax.random.uniform(ks[3], (4 * hidden_size,), jnp.float32, -bound, bound)
    b_hh = jax.random.uniform(ks[4], (4 * hidden_size,), jnp.float32, -bound, bound)
    w_fc = jax.random.uniform(ks[5], (num_classes, hidden_size),
                              jnp.float32, -bound, bound)
    b_fc = jax.random.uniform(ks[6], (num_classes,), jnp.float32, -bound, bound)

    params = prepare_params(w_ih, w_hh, b_ih, b_hh, w_fc, b_fc)
    out = lstm_forward(x, *params)
    out = jax.block_until_ready(out)

    ref = lstm_reference(x, w_ih, w_hh, b_ih, b_hh, w_fc, b_fc)
    assert out.shape == (batch, num_classes), out.shape
    assert jnp.allclose(out, ref, atol=1e-5, rtol=1e-5), (out, ref)

    print("KERNEL_OK")
</pallas_src>

<mosaic_0001>
module attributes {stable_mosaic.version = 11 : i64} {
  func.func @_lstm_kernel(%arg0: memref<2x8x1xf32, #tpu.memory_space<vmem>>, %arg1: memref<1x128xf32, #tpu.memory_space<vmem>>, %arg2: memref<32x128xf32, #tpu.memory_space<vmem>>, %arg3: memref<1x128xf32, #tpu.memory_space<vmem>>, %arg4: memref<1x32xf32, #tpu.memory_space<vmem>>, %arg5: memref<1x1xf32, #tpu.memory_space<vmem>>, %arg6: memref<2x1xf32, #tpu.memory_space<vmem>>) attributes {dimension_semantics = [], scalar_prefetch = 0 : i64, scratch_operands = 0 : i64, tpu.core_type = #tpu.core_type<tc>} {
    %c0 = arith.constant 0 : index
    %c0_0 = arith.constant 0 : index
    %c0_1 = arith.constant 0 : index
    %0 = vector.load %arg0[%c0, %c0_0, %c0_1] : memref<2x8x1xf32, #tpu.memory_space<vmem>>, vector<2x8x1xf32>
    %c0_2 = arith.constant 0 : index
    %c0_3 = arith.constant 0 : index
    %1 = vector.load %arg1[%c0_2, %c0_3] : memref<1x128xf32, #tpu.memory_space<vmem>>, vector<1x128xf32>
    %c0_4 = arith.constant 0 : index
    %c0_5 = arith.constant 0 : index
    %2 = vector.load %arg2[%c0_4, %c0_5] : memref<32x128xf32, #tpu.memory_space<vmem>>, vector<32x128xf32>
    %c0_6 = arith.constant 0 : index
    %c0_7 = arith.constant 0 : index
    %3 = vector.load %arg3[%c0_6, %c0_7] : memref<1x128xf32, #tpu.memory_space<vmem>>, vector<1x128xf32>
    %cst = arith.constant 0.000000e+00 : f32
    %4 = vector.broadcast %cst : f32 to vector<2x32xf32>
    %5 = vector.extract_strided_slice %0 {offsets = [0, 0, 0], sizes = [2, 1, 1], strides = [1, 1, 1]} : vector<2x8x1xf32> to vector<2x1x1xf32>
    %6 = vector.shape_cast %5 : vector<2x1x1xf32> to vector<2x1xf32>
    %7 = vector.broadcast %6 : vector<2x1xf32> to vector<2x128xf32>
    %8 = vector.broadcast %1 : vector<1x128xf32> to vector<2x128xf32>
    %9 = arith.mulf %7, %8 : vector<2x128xf32>
    %10 = vector.broadcast %3 : vector<1x128xf32> to vector<2x128xf32>
    %11 = arith.addf %9, %10 : vector<2x128xf32>
    %12 = math.tanh %11 : vector<2x128xf32>
    %13 = vector.extract_strided_slice %12 {offsets = [0, 0], sizes = [2, 32], strides = [1, 1]} : vector<2x128xf32> to vector<2x32xf32>
    %cst_8 = arith.constant 1.000000e+00 : f32
    %14 = vector.broadcast %cst_8 : f32 to vector<2x32xf32>
    %15 = arith.addf %13, %14 : vector<2x32xf32>
    %cst_9 = arith.constant 5.000000e-01 : f32
    %16 = vector.broadcast %cst_9 : f32 to vector<2x32xf32>
    %17 = arith.mulf %16, %15 : vector<2x32xf32>
    %18 = vector.extract_strided_slice %12 {offsets = [0, 32], sizes = [2, 32], strides = [1, 1]} : vector<2x128xf32> to vector<2x32xf32>
    %cst_10 = arith.constant 1.000000e+00 : f32
    %19 = vector.broadcast %cst_10 : f32 to vector<2x32xf32>
    %20 = arith.addf %18, %19 : vector<2x32xf32>
    %cst_11 = arith.constant 5.000000e-01 : f32
    %21 = vector.broadcast %cst_11 : f32 to vector<2x32xf32>
    %22 = arith.mulf %21, %20 : vector<2x32xf32>
    %23 = vector.extract_strided_slice %12 {offsets = [0, 64], sizes = [2, 32], strides = [1, 1]} : vector<2x128xf32> to vector<2x32xf32>
    %24 = vector.extract_strided_slice %12 {offsets = [0, 96], sizes = [2, 32], strides = [1, 1]} : vector<2x128xf32> to vector<2x32xf32>
    %cst_12 = arith.constant 1.000000e+00 : f32
    %25 = vector.broadcast %cst_12 : f32 to vector<2x32xf32>
    %26 = arith.addf %24, %25 : vector<2x32xf32>
    %cst_13 = arith.constant 5.000000e-01 : f32
    %27 = vector.broadcast %cst_13 : f32 to vector<2x32xf32>
    %28 = arith.mulf %27, %26 : vector<2x32xf32>
    %29 = arith.mulf %22, %4 : vector<2x32xf32>
    %30 = arith.mulf %17, %23 : vector<2x32xf32>
    %31 = arith.addf %29, %30 : vector<2x32xf32>
    %32 = math.tanh %31 : vector<2x32xf32>
    %33 = arith.mulf %28, %32 : vector<2x32xf32>
    %34 = vector.extract_strided_slice %0 {offsets = [0, 1, 0], sizes = [2, 1, 1], strides = [1, 1, 1]} : vector<2x8x1xf32> to vector<2x1x1xf32>
    %35 = vector.shape_cast %34 : vector<2x1x1xf32> to vector<2x1xf32>
    %36 = vector.broadcast %35 : vector<2x1xf32> to vector<2x128xf32>
    %37 = vector.broadcast %1 : vector<1x128xf32> to vector<2x128xf32>
    %38 = arith.mulf %36, %37 : vector<2x128xf32>
    %39 = vector.broadcast %3 : vector<1x128xf32> to vector<2x128xf32>
    %40 = arith.addf %38, %39 : vector<2x128xf32>
    %cst_14 = arith.constant dense<0.000000e+00> : vector<2x128xf32>
    %41 = tpu.matmul %33, %2, %cst_14 {dimension_numbers = #tpu.dot_dimension_numbers<[1], [0], [0], [1], [0, 0, 1, 1], [], []>} : vector<2x32xf32>, vector<32x128xf32>, vector<2x128xf32> -> vector<2x128xf32>
    %42 = arith.addf %41, %40 : vector<2x128xf32>
    %43 = math.tanh %42 : vector<2x128xf32>
    %44 = vector.extract_strided_slice %43 {offsets = [0, 0], sizes = [2, 32], strides = [1, 1]} : vector<2x128xf32> to vector<2x32xf32>
    %cst_15 = arith.constant 1.000000e+00 : f32
    %45 = vector.broadcast %cst_15 : f32 to vector<2x32xf32>
    %46 = arith.addf %44, %45 : vector<2x32xf32>
    %cst_16 = arith.constant 5.000000e-01 : f32
    %47 = vector.broadcast %cst_16 : f32 to vector<2x32xf32>
    %48 = arith.mulf %47, %46 : vector<2x32xf32>
    %49 = vector.extract_strided_slice %43 {offsets = [0, 32], sizes = [2, 32], strides = [1, 1]} : vector<2x128xf32> to vector<2x32xf32>
    %cst_17 = arith.constant 1.000000e+00 : f32
    %50 = vector.broadcast %cst_17 : f32 to vector<2x32xf32>
    %51 = arith.addf %49, %50 : vector<2x32xf32>
    %cst_18 = arith.constant 5.000000e-01 : f32
    %52 = vector.broadcast %cst_18 : f32 to vector<2x32xf32>
    %53 = arith.mulf %52, %51 : vector<2x32xf32>
    %54 = vector.extract_strided_slice %43 {offsets = [0, 64], sizes = [2, 32], strides = [1, 1]} : vector<2x128xf32> to vector<2x32xf32>
    %55 = vector.extract_strided_slice %43 {offsets = [0, 96], sizes = [2, 32], strides = [1, 1]} : vector<2x128xf32> to vector<2x32xf32>
    %cst_19 = arith.constant 1.000000e+00 : f32
    %56 = vector.broadcast %cst_19 : f32 to vector<2x32xf32>
    %57 = arith.addf %55, %56 : vector<2x32xf32>
    %cst_20 = arith.constant 5.000000e-01 : f32
    %58 = vector.broadcast %cst_20 : f32 to vector<2x32xf32>
    %59 = arith.mulf %58, %57 : vector<2x32xf32>
    %60 = arith.mulf %53, %31 : vector<2x32xf32>
    %61 = arith.mulf %48, %54 : vector<2x32xf32>
    %62 = arith.addf %60, %61 : vector<2x32xf32>
    %63 = math.tanh %62 : vector<2x32xf32>
    %64 = arith.mulf %59, %63 : vector<2x32xf32>
    %65 = vector.extract_strided_slice %0 {offsets = [0, 2, 0], sizes = [2, 1, 1], strides = [1, 1, 1]} : vector<2x8x1xf32> to vector<2x1x1xf32>
    %66 = vector.shape_cast %65 : vector<2x1x1xf32> to vector<2x1xf32>
    %67 = vector.broadcast %66 : vector<2x1xf32> to vector<2x128xf32>
    %68 = vector.broadcast %1 : vector<1x128xf32> to vector<2x128xf32>
    %69 = arith.mulf %67, %68 : vector<2x128xf32>
    %70 = vector.broadcast %3 : vector<1x128xf32> to vector<2x128xf32>
    %71 = arith.addf %69, %70 : vector<2x128xf32>
    %cst_21 = arith.constant dense<0.000000e+00> : vector<2x128xf32>
    %72 = tpu.matmul %64, %2, %cst_21 {dimension_numbers = #tpu.dot_dimension_numbers<[1], [0], [0], [1], [0, 0, 1, 1], [], []>} : vector<2x32xf32>, vector<32x128xf32>, vector<2x128xf32> -> vector<2x128xf32>
    %73 = arith.addf %72, %71 : vector<2x128xf32>
    %74 = math.tanh %73 : vector<2x128xf32>
    %75 = vector.extract_strided_slice %74 {offsets = [0, 0], sizes = [2, 32], strides = [1, 1]} : vector<2x128xf32> to vector<2x32xf32>
    %cst_22 = arith.constant 1.000000e+00 : f32
    %76 = vector.broadcast %cst_22 : f32 to vector<2x32xf32>
    %77 = arith.addf %75, %76 : vector<2x32xf32>
    %cst_23 = arith.constant 5.000000e-01 : f32
    %78 = vector.broadcast %cst_23 : f32 to vector<2x32xf32>
    %79 = arith.mulf %78, %77 : vector<2x32xf32>
    %80 = vector.extract_strided_slice %74 {offsets = [0, 32], sizes = [2, 32], strides = [1, 1]} : vector<2x128xf32> to vector<2x32xf32>
    %cst_24 = arith.constant 1.000000e+00 : f32
    %81 = vector.broadcast %cst_24 : f32 to vector<2x32xf32>
    %82 = arith.addf %80, %81 : vector<2x32xf32>
    %cst_25 = arith.constant 5.000000e-01 : f32
    %83 = vector.broadcast %cst_25 : f32 to vector<2x32xf32>
    %84 = arith.mulf %83, %82 : vector<2x32xf32>
    %85 = vector.extract_strided_slice %74 {offsets = [0, 64], sizes = [2, 32], strides = [1, 1]} : vector<2x128xf32> to vector<2x32xf32>
    %86 = vector.extract_strided_slice %74 {offsets = [0, 96], sizes = [2, 32], strides = [1, 1]} : vector<2x128xf32> to vector<2x32xf32>
    %cst_26 = arith.constant 1.000000e+00 : f32
    %87 = vector.broadcast %cst_26 : f32 to vector<2x32xf32>
    %88 = arith.addf %86, %87 : vector<2x32xf32>
    %cst_27 = arith.constant 5.000000e-01 : f32
    %89 = vector.broadcast %cst_27 : f32 to vector<2x32xf32>
    %90 = arith.mulf %89, %88 : vector<2x32xf32>
    %91 = arith.mulf %84, %62 : vector<2x32xf32>
    %92 = arith.mulf %79, %85 : vector<2x32xf32>
    %93 = arith.addf %91, %92 : vector<2x32xf32>
    %94 = math.tanh %93 : vector<2x32xf32>
    %95 = arith.mulf %90, %94 : vector<2x32xf32>
    %96 = vector.extract_strided_slice %0 {offsets = [0, 3, 0], sizes = [2, 1, 1], strides = [1, 1, 1]} : vector<2x8x1xf32> to vector<2x1x1xf32>
    %97 = vector.shape_cast %96 : vector<2x1x1xf32> to vector<2x1xf32>
    %98 = vector.broadcast %97 : vector<2x1xf32> to vector<2x128xf32>
    %99 = vector.broadcast %1 : vector<1x128xf32> to vector<2x128xf32>
    %100 = arith.mulf %98, %99 : vector<2x128xf32>
    %101 = vector.broadcast %3 : vector<1x128xf32> to vector<2x128xf32>
    %102 = arith.addf %100, %101 : vector<2x128xf32>
    %cst_28 = arith.constant dense<0.000000e+00> : vector<2x128xf32>
    %103 = tpu.matmul %95, %2, %cst_28 {dimension_numbers = #tpu.dot_dimension_numbers<[1], [0], [0], [1], [0, 0, 1, 1], [], []>} : vector<2x32xf32>, vector<32x128xf32>, vector<2x128xf32> -> vector<2x128xf32>
    %104 = arith.addf %103, %102 : vector<2x128xf32>
    %105 = math.tanh %104 : vector<2x128xf32>
    %106 = vector.extract_strided_slice %105 {offsets = [0, 0], sizes = [2, 32], strides = [1, 1]} : vector<2x128xf32> to vector<2x32xf32>
    %cst_29 = arith.constant 1.000000e+00 : f32
    %107 = vector.broadcast %cst_29 : f32 to vector<2x32xf32>
    %108 = arith.addf %106, %107 : vector<2x32xf32>
    %cst_30 = arith.constant 5.000000e-01 : f32
    %109 = vector.broadcast %cst_30 : f32 to vector<2x32xf32>
    %110 = arith.mulf %109, %108 : vector<2x32xf32>
    %111 = vector.extract_strided_slice %105 {offsets = [0, 32], sizes = [2, 32], strides = [1, 1]} : vector<2x128xf32> to vector<2x32xf32>
    %cst_31 = arith.constant 1.000000e+00 : f32
    %112 = vector.broadcast %cst_31 : f32 to vector<2x32xf32>
    %113 = arith.addf %111, %112 : vector<2x32xf32>
    %cst_32 = arith.constant 5.000000e-01 : f32
    %114 = vector.broadcast %cst_32 : f32 to vector<2x32xf32>
    %115 = arith.mulf %114, %113 : vector<2x32xf32>
    %116 = vector.extract_strided_slice %105 {offsets = [0, 64], sizes = [2, 32], strides = [1, 1]} : vector<2x128xf32> to vector<2x32xf32>
    %117 = vector.extract_strided_slice %105 {offsets = [0, 96], sizes = [2, 32], strides = [1, 1]} : vector<2x128xf32> to vector<2x32xf32>
    %cst_33 = arith.constant 1.000000e+00 : f32
    %118 = vector.broadcast %cst_33 : f32 to vector<2x32xf32>
    %119 = arith.addf %117, %118 : vector<2x32xf32>
    %cst_34 = arith.constant 5.000000e-01 : f32
    %120 = vector.broadcast %cst_34 : f32 to vector<2x32xf32>
    %121 = arith.mulf %120, %119 : vector<2x32xf32>
    %122 = arith.mulf %115, %93 : vector<2x32xf32>
    %123 = arith.mulf %110, %116 : vector<2x32xf32>
    %124 = arith.addf %122, %123 : vector<2x32xf32>
    %125 = math.tanh %124 : vector<2x32xf32>
    %126 = arith.mulf %121, %125 : vector<2x32xf32>
    %127 = vector.extract_strided_slice %0 {offsets = [0, 4, 0], sizes = [2, 1, 1], strides = [1, 1, 1]} : vector<2x8x1xf32> to vector<2x1x1xf32>
    %128 = vector.shape_cast %127 : vector<2x1x1xf32> to vector<2x1xf32>
    %129 = vector.broadcast %128 : vector<2x1xf32> to vector<2x128xf32>
    %130 = vector.broadcast %1 : vector<1x128xf32> to vector<2x128xf32>
    %131 = arith.mulf %129, %130 : vector<2x128xf32>
    %132 = vector.broadcast %3 : vector<1x128xf32> to vector<2x128xf32>
    %133 = arith.addf %131, %132 : vector<2x128xf32>
    %cst_35 = arith.constant dense<0.000000e+00> : vector<2x128xf32>
    %134 = tpu.matmul %126, %2, %cst_35 {dimension_numbers = #tpu.dot_dimension_numbers<[1], [0], [0], [1], [0, 0, 1, 1], [], []>} : vector<2x32xf32>, vector<32x128xf32>, vector<2x128xf32> -> vector<2x128xf32>
    %135 = arith.addf %134, %133 : vector<2x128xf32>
    %136 = math.tanh %135 : vector<2x128xf32>
    %137 = vector.extract_strided_slice %136 {offsets = [0, 0], sizes = [2, 32], strides = [1, 1]} : vector<2x128xf32> to vector<2x32xf32>
    %cst_36 = arith.constant 1.000000e+00 : f32
    %138 = vector.broadcast %cst_36 : f32 to vector<2x32xf32>
    %139 = arith.addf %137, %138 : vector<2x32xf32>
    %cst_37 = arith.constant 5.000000e-01 : f32
    %140 = vector.broadcast %cst_37 : f32 to vector<2x32xf32>
    %141 = arith.mulf %140, %139 : vector<2x32xf32>
    %142 = vector.extract_strided_slice %136 {offsets = [0, 32], sizes = [2, 32], strides = [1, 1]} : vector<2x128xf32> to vector<2x32xf32>
    %cst_38 = arith.constant 1.000000e+00 : f32
    %143 = vector.broadcast %cst_38 : f32 to vector<2x32xf32>
    %144 = arith.addf %142, %143 : vector<2x32xf32>
    %cst_39 = arith.constant 5.000000e-01 : f32
    %145 = vector.broadcast %cst_39 : f32 to vector<2x32xf32>
    %146 = arith.mulf %145, %144 : vector<2x32xf32>
    %147 = vector.extract_strided_slice %136 {offsets = [0, 64], sizes = [2, 32], strides = [1, 1]} : vector<2x128xf32> to vector<2x32xf32>
    %148 = vector.extract_strided_slice %136 {offsets = [0, 96], sizes = [2, 32], strides = [1, 1]} : vector<2x128xf32> to vector<2x32xf32>
    %cst_40 = arith.constant 1.000000e+00 : f32
    %149 = vector.broadcast %cst_40 : f32 to vector<2x32xf32>
    %150 = arith.addf %148, %149 : vector<2x32xf32>
    %cst_41 = arith.constant 5.000000e-01 : f32
    %151 = vector.broadcast %cst_41 : f32 to vector<2x32xf32>
    %152 = arith.mulf %151, %150 : vector<2x32xf32>
    %153 = arith.mulf %146, %124 : vector<2x32xf32>
    %154 = arith.mulf %141, %147 : vector<2x32xf32>
    %155 = arith.addf %153, %154 : vector<2x32xf32>
    %156 = math.tanh %155 : vector<2x32xf32>
    %157 = arith.mulf %152, %156 : vector<2x32xf32>
    %158 = vector.extract_strided_slice %0 {offsets = [0, 5, 0], sizes = [2, 1, 1], strides = [1, 1, 1]} : vector<2x8x1xf32> to vector<2x1x1xf32>
    %159 = vector.shape_cast %158 : vector<2x1x1xf32> to vector<2x1xf32>
    %160 = vector.broadcast %159 : vector<2x1xf32> to vector<2x128xf32>
    %161 = vector.broadcast %1 : vector<1x128xf32> to vector<2x128xf32>
    %162 = arith.mulf %160, %161 : vector<2x128xf32>
    %163 = vector.broadcast %3 : vector<1x128xf32> to vector<2x128xf32>
    %164 = arith.addf %162, %163 : vector<2x128xf32>
    %cst_42 = arith.constant dense<0.000000e+00> : vector<2x128xf32>
    %165 = tpu.matmul %157, %2, %cst_42 {dimension_numbers = #tpu.dot_dimension_numbers<[1], [0], [0], [1], [0, 0, 1, 1], [], []>} : vector<2x32xf32>, vector<32x128xf32>, vector<2x128xf32> -> vector<2x128xf32>
    %166 = arith.addf %165, %164 : vector<2x128xf32>
    %167 = math.tanh %166 : vector<2x128xf32>
    %168 = vector.extract_strided_slice %167 {offsets = [0, 0], sizes = [2, 32], strides = [1, 1]} : vector<2x128xf32> to vector<2x32xf32>
    %cst_43 = arith.constant 1.000000e+00 : f32
    %169 = vector.broadcast %cst_43 : f32 to vector<2x32xf32>
    %170 = arith.addf %168, %169 : vector<2x32xf32>
    %cst_44 = arith.constant 5.000000e-01 : f32
    %171 = vector.broadcast %cst_44 : f32 to vector<2x32xf32>
    %172 = arith.mulf %171, %170 : vector<2x32xf32>
    %173 = vector.extract_strided_slice %167 {offsets = [0, 32], sizes = [2, 32], strides = [1, 1]} : vector<2x128xf32> to vector<2x32xf32>
    %cst_45 = arith.constant 1.000000e+00 : f32
    %174 = vector.broadcast %cst_45 : f32 to vector<2x32xf32>
    %175 = arith.addf %173, %174 : vector<2x32xf32>
    %cst_46 = arith.constant 5.000000e-01 : f32
    %176 = vector.broadcast %cst_46 : f32 to vector<2x32xf32>
    %177 = arith.mulf %176, %175 : vector<2x32xf32>
    %178 = vector.extract_strided_slice %167 {offsets = [0, 64], sizes = [2, 32], strides = [1, 1]} : vector<2x128xf32> to vector<2x32xf32>
    %179 = vector.extract_strided_slice %167 {offsets = [0, 96], sizes = [2, 32], strides = [1, 1]} : vector<2x128xf32> to vector<2x32xf32>
    %cst_47 = arith.constant 1.000000e+00 : f32
    %180 = vector.broadcast %cst_47 : f32 to vector<2x32xf32>
    %181 = arith.addf %179, %180 : vector<2x32xf32>
    %cst_48 = arith.constant 5.000000e-01 : f32
    %182 = vector.broadcast %cst_48 : f32 to vector<2x32xf32>
    %183 = arith.mulf %182, %181 : vector<2x32xf32>
    %184 = arith.mulf %177, %155 : vector<2x32xf32>
    %185 = arith.mulf %172, %178 : vector<2x32xf32>
    %186 = arith.addf %184, %185 : vector<2x32xf32>
    %187 = math.tanh %186 : vector<2x32xf32>
    %188 = arith.mulf %183, %187 : vector<2x32xf32>
    %189 = vector.extract_strided_slice %0 {offsets = [0, 6, 0], sizes = [2, 1, 1], strides = [1, 1, 1]} : vector<2x8x1xf32> to vector<2x1x1xf32>
    %190 = vector.shape_cast %189 : vector<2x1x1xf32> to vector<2x1xf32>
    %191 = vector.broadcast %190 : vector<2x1xf32> to vector<2x128xf32>
    %192 = vector.broadcast %1 : vector<1x128xf32> to vector<2x128xf32>
    %193 = arith.mulf %191, %192 : vector<2x128xf32>
    %194 = vector.broadcast %3 : vector<1x128xf32> to vector<2x128xf32>
    %195 = arith.addf %193, %194 : vector<2x128xf32>
    %cst_49 = arith.constant dense<0.000000e+00> : vector<2x128xf32>
    %196 = tpu.matmul %188, %2, %cst_49 {dimension_numbers = #tpu.dot_dimension_numbers<[1], [0], [0], [1], [0, 0, 1, 1], [], []>} : vector<2x32xf32>, vector<32x128xf32>, vector<2x128xf32> -> vector<2x128xf32>
    %197 = arith.addf %196, %195 : vector<2x128xf32>
    %198 = math.tanh %197 : vector<2x128xf32>
    %199 = vector.extract_strided_slice %198 {offsets = [0, 0], sizes = [2, 32], strides = [1, 1]} : vector<2x128xf32> to vector<2x32xf32>
    %cst_50 = arith.constant 1.000000e+00 : f32
    %200 = vector.broadcast %cst_50 : f32 to vector<2x32xf32>
    %201 = arith.addf %199, %200 : vector<2x32xf32>
    %cst_51 = arith.constant 5.000000e-01 : f32
    %202 = vector.broadcast %cst_51 : f32 to vector<2x32xf32>
    %203 = arith.mulf %202, %201 : vector<2x32xf32>
    %204 = vector.extract_strided_slice %198 {offsets = [0, 32], sizes = [2, 32], strides = [1, 1]} : vector<2x128xf32> to vector<2x32xf32>
    %cst_52 = arith.constant 1.000000e+00 : f32
    %205 = vector.broadcast %cst_52 : f32 to vector<2x32xf32>
    %206 = arith.addf %204, %205 : vector<2x32xf32>
    %cst_53 = arith.constant 5.000000e-01 : f32
    %207 = vector.broadcast %cst_53 : f32 to vector<2x32xf32>
    %208 = arith.mulf %207, %206 : vector<2x32xf32>
    %209 = vector.extract_strided_slice %198 {offsets = [0, 64], sizes = [2, 32], strides = [1, 1]} : vector<2x128xf32> to vector<2x32xf32>
    %210 = vector.extract_strided_slice %198 {offsets = [0, 96], sizes = [2, 32], strides = [1, 1]} : vector<2x128xf32> to vector<2x32xf32>
    %cst_54 = arith.constant 1.000000e+00 : f32
    %211 = vector.broadcast %cst_54 : f32 to vector<2x32xf32>
    %212 = arith.addf %210, %211 : vector<2x32xf32>
    %cst_55 = arith.constant 5.000000e-01 : f32
    %213 = vector.broadcast %cst_55 : f32 to vector<2x32xf32>
    %214 = arith.mulf %213, %212 : vector<2x32xf32>
    %215 = arith.mulf %208, %186 : vector<2x32xf32>
    %216 = arith.mulf %203, %209 : vector<2x32xf32>
    %217 = arith.addf %215, %216 : vector<2x32xf32>
    %218 = math.tanh %217 : vector<2x32xf32>
    %219 = arith.mulf %214, %218 : vector<2x32xf32>
    %220 = vector.extract_strided_slice %0 {offsets = [0, 7, 0], sizes = [2, 1, 1], strides = [1, 1, 1]} : vector<2x8x1xf32> to vector<2x1x1xf32>
    %221 = vector.shape_cast %220 : vector<2x1x1xf32> to vector<2x1xf32>
    %222 = vector.broadcast %221 : vector<2x1xf32> to vector<2x128xf32>
    %223 = vector.broadcast %1 : vector<1x128xf32> to vector<2x128xf32>
    %224 = arith.mulf %222, %223 : vector<2x128xf32>
    %225 = vector.broadcast %3 : vector<1x128xf32> to vector<2x128xf32>
    %226 = arith.addf %224, %225 : vector<2x128xf32>
    %cst_56 = arith.constant dense<0.000000e+00> : vector<2x128xf32>
    %227 = tpu.matmul %219, %2, %cst_56 {dimension_numbers = #tpu.dot_dimension_numbers<[1], [0], [0], [1], [0, 0, 1, 1], [], []>} : vector<2x32xf32>, vector<32x128xf32>, vector<2x128xf32> -> vector<2x128xf32>
    %228 = arith.addf %227, %226 : vector<2x128xf32>
    %229 = math.tanh %228 : vector<2x128xf32>
    %230 = vector.extract_strided_slice %229 {offsets = [0, 0], sizes = [2, 32], strides = [1, 1]} : vector<2x128xf32> to vector<2x32xf32>
    %cst_57 = arith.constant 1.000000e+00 : f32
    %231 = vector.broadcast %cst_57 : f32 to vector<2x32xf32>
    %232 = arith.addf %230, %231 : vector<2x32xf32>
    %cst_58 = arith.constant 5.000000e-01 : f32
    %233 = vector.broadcast %cst_58 : f32 to vector<2x32xf32>
    %234 = arith.mulf %233, %232 : vector<2x32xf32>
    %235 = vector.extract_strided_slice %229 {offsets = [0, 32], sizes = [2, 32], strides = [1, 1]} : vector<2x128xf32> to vector<2x32xf32>
    %cst_59 = arith.constant 1.000000e+00 : f32
    %236 = vector.broadcast %cst_59 : f32 to vector<2x32xf32>
    %237 = arith.addf %235, %236 : vector<2x32xf32>
    %cst_60 = arith.constant 5.000000e-01 : f32
    %238 = vector.broadcast %cst_60 : f32 to vector<2x32xf32>
    %239 = arith.mulf %238, %237 : vector<2x32xf32>
    %240 = vector.extract_strided_slice %229 {offsets = [0, 64], sizes = [2, 32], strides = [1, 1]} : vector<2x128xf32> to vector<2x32xf32>
    %241 = vector.extract_strided_slice %229 {offsets = [0, 96], sizes = [2, 32], strides = [1, 1]} : vector<2x128xf32> to vector<2x32xf32>
    %cst_61 = arith.constant 1.000000e+00 : f32
    %242 = vector.broadcast %cst_61 : f32 to vector<2x32xf32>
    %243 = arith.addf %241, %242 : vector<2x32xf32>
    %cst_62 = arith.constant 5.000000e-01 : f32
    %244 = vector.broadcast %cst_62 : f32 to vector<2x32xf32>
    %245 = arith.mulf %244, %243 : vector<2x32xf32>
    %246 = arith.mulf %239, %217 : vector<2x32xf32>
    %247 = arith.mulf %234, %240 : vector<2x32xf32>
    %248 = arith.addf %246, %247 : vector<2x32xf32>
    %249 = math.tanh %248 : vector<2x32xf32>
    %250 = arith.mulf %245, %249 : vector<2x32xf32>
    %c0_63 = arith.constant 0 : index
    %c0_64 = arith.constant 0 : index
    %251 = vector.load %arg4[%c0_63, %c0_64] : memref<1x32xf32, #tpu.memory_space<vmem>>, vector<1x32xf32>
    %252 = vector.broadcast %251 : vector<1x32xf32> to vector<2x32xf32>
    %253 = arith.mulf %250, %252 : vector<2x32xf32>
    %cst_65 = arith.constant dense<0.000000e+00> : vector<2xf32>
    %254 = vector.multi_reduction <add>, %253, %cst_65 [1] : vector<2x32xf32> to vector<2xf32>
    %255 = vector.shape_cast %254 : vector<2xf32> to vector<2x1xf32>
    %c0_66 = arith.constant 0 : index
    %c0_67 = arith.constant 0 : index
    %256 = vector.load %arg5[%c0_66, %c0_67] : memref<1x1xf32, #tpu.memory_space<vmem>>, vector<1x1xf32>
    %257 = vector.broadcast %256 : vector<1x1xf32> to vector<2x1xf32>
    %258 = arith.addf %255, %257 : vector<2x1xf32>
    %c0_68 = arith.constant 0 : index
    %c0_69 = arith.constant 0 : index
    %259 = vector.load %arg6[%c0_68, %c0_69] : memref<2x1xf32, #tpu.memory_space<vmem>>, vector<2x1xf32>
    tpu.vector_store %arg6[%c0_68, %c0_69], %258 {strides = array<i32>} : memref<2x1xf32, #tpu.memory_space<vmem>>, vector<2x1xf32>,
    return
  }
}

</mosaic_0001>

<bundles_post_ra>
// kernel: lstm_forward.1
= control target key start
LH: loop header
LB: loop body
LE: loop exit
PB: predicated region body
PF: predicated region fallthrough
CT: control target
= control target key end

     0   :  { %s1259_s0 = inlined_call_operand.vmem [shape: f32[2,8,1], index: 0, kind: input, shape index: {}]   ;;  %s1260_s1 = inlined_call_operand.vmem [shape: f32[1,128], index: 1, kind: input, shape index: {}]   ;;  %s1261_s2 = inlined_call_operand.hbm [shape: f32[32,128], index: 2, kind: input, shape index: {}]   ;;  %s1262_s3 = inlined_call_operand.vmem [shape: f32[1,128], index: 3, kind: input, shape index: {}]   ;;  %s1263_s4 = inlined_call_operand.vmem [shape: f32[1,32], index: 4, kind: input, shape index: {}]   ;;  %s1264_s5 = inlined_call_operand.<no memory space> [shape: f32[1,1], index: 5, kind: input, shape index: {}]   ;;  %s1265_s6 = inlined_call_operand.vmem [shape: f32[2,1], index: 6, kind: output, shape index: {}]  }
   0x1   :  { %v11_v0 = vstv %s1264_s5 }
   0x2   :  { %12 = vst [vmem:[#allocation2] sm:$0x1] %v11_v0 }
   0x3   :  { %13 = vsyncpa [#allocation4], 0  ;;  %s1041_s23 = smov [#allocation3]  }
   0x4   :  { %s23_s24 = sshll.u32 %s1041_s23, 4  ;;  %s24_s24 = int_to_ptr.vmem [resolvable:$true] %s23_s24 }
   0x5   :  { %s1027_s25 = scalar_lea.vmem %s24_s24, 512  ;;  %p1032_p1 = scmp.lt.s32.totalorder %s24_s24, %s24_s24 }
   0x6   :  { %p1028_p0 = scmp.ne.s32.totalorder %s24_s24, %s1027_s25  ;;  %p1033_p2 = scmp.lt.s32.totalorder %s1027_s25, %s1027_s25 }
   0x8   :  { %p1034_p3 = por %p1033_p2, %p1032_p1 }
   0xa   :  { %p1035_p4 = pnand %p1034_p3, %p1028_p0 }
   0xc   :  { %1038 = shalt.err (!%p1035_p4)
}
   0xd   :  { %s1042_s26 = smov 128   ;;  %s1043_s27 = smov 8  }
   0xe   :  { %29 = dma.hbm_to_vmem [thread:$0]  %s1261_s2, 512, %s24_s24, [#allocation4], %s1042_s26, %s1042_s26, %s1043_s27  }
   0xf   :  { %1039 = dma.done.wait [#allocation4], 512  }
  0x10   :  { %1040 = vsyncadd [#allocation4], 4294966784  ;;  %v1044_v1 = vmov 0   ;;  %v40_v2 = vld [vmem:[%s1259_s0 + $0x8] sm:$0xff]  ;;  %v39_v3 = vld [vmem:[%s1259_s0] sm:$0xff]  ;;  %vm116_vm0 = vcmask 1041409  }
  0x11   :  { %982 = vset.pattern.permute.xlu0 %v1044_v1  ;;  %v850_v4 = vld [vmem:[%s1260_s1] ss:$0 sm:$0xff]  ;;  %s1045_s0 = smov 64   ;;  %s1046_s1 = smov 32   ;;  %v1047_v51 = vmov 0.0   ;;  %v1132_v52 = vld [vmem:[#allocation3 + $0x10] sm:$0xff] }
  0x12   :  { %54 = vperm.xlu0 %982, %v40_v2   ;;  %v851_v5 = vld [vmem:[%s1262_s3] ss:$0 sm:$0xff]  ;;  %896 = vmatprep.subr.mxu0 %v1047_v51  ;;  %vm1048_vm1 = vmmov 0   ;;  %v1139_v53 = vld [vmem:[#allocation3 + $0x8] sm:$0xff]  ;;  %v1145_v55 = vld [vmem:[#allocation3] sm:$0xff]  ;;  %vm125_vm2 = vcmask 261120  }
  0x13   :  { %v1129_v50 = vld [vmem:[#allocation3 + $0x18] sm:$0xff]  ;;  %904 = vmatprep.mubr.msk.f32.mxu0 %vm1048_vm1, %v1047_v51  ;;  %907 = vmatprep.subr.mxu1 %v1047_v51  ;;  %s1049_s13 = smov 96   ;;  %vm831_vm3 = vcmask 254976   ;;  %vm843_vm4 = vcmask 1024  }
  0x14   :  { %897 = vmatpush3.msra.mxu0 %v1129_v50  ;;  %908 = vmatpush3.msra.mxu1 %v1129_v50 }
  0x15   :  { %898 = vmatprep.subr.mxu0 %v1047_v51  ;;  %909 = vmatprep.subr.mxu1 %v1047_v51 }
  0x16   :  { %49 = vperm.xlu0 %982, %v39_v3   ;;  %899 = vmatpush3.msra.mxu0 %v1132_v52 }
  0x17   :  { %900 = vmatprep.subr.mxu0 %v1047_v51  ;;  %910 = vmatpush3.msra.mxu1 %v1132_v52 }
  0x18   :  { %901 = vmatpush3.msra.mxu0 %v1139_v53  ;;  %911 = vmatprep.subr.mxu1 %v1047_v51 }
  0x19   :  { %902 = vmatprep.subr.mxu0 %v1047_v51  ;;  %912 = vmatpush3.msra.mxu1 %v1139_v53 }
  0x1a   :  { %903 = vmatpush3.msra.mxu0 %v1145_v55  ;;  %913 = vmatprep.subr.mxu1 %v1047_v51 }
  0x1b   :  { %915 = vmatprep.mubr.msk.f32.mxu1 %vm1048_vm1, %v1047_v51  ;;  %914 = vmatpush3.msra.mxu1 %v1145_v55 }
  0x1c   :  { %918 = vmatprep.subr.mxu0 %v1047_v51  ;;  %929 = vmatprep.subr.mxu1 %v1047_v51 }
  0x8d   :  { %v55_v6 = vpop.permute.xlu0 %54 }
  0x8e   :  { %v64_v7 = vmul.f32 %v850_v4, %v55_v6 }
  0x90   :  { %v72_v8 = vadd.f32 %v851_v5, %v64_v7 }
  0x91   :  { %v50_v9 = vpop.permute.xlu0 %49 }
  0x92   :  { %v63_v10 = vmul.f32 %v850_v4, %v50_v9  ;;  %983 = vtanh.f32 %v72_v8  ;;  %v227_v12 = vrot.slane %v72_v8, 1  ;;  %v326_v13 = vrot.slane %v72_v8, 2 }
  0x93   :  { %v425_v14 = vrot.slane %v72_v8, 3  ;;  %v524_v15 = vrot.slane %v72_v8, 4  ;;  %v623_v16 = vrot.slane %v72_v8, 5  ;;  %v722_v17 = vrot.slane %v72_v8, 6 }
  0x94   :  { %v71_v11 = vadd.f32 %v851_v5, %v63_v10 }
  0x96   :  { %985 = vtanh.f32 %v71_v11  ;;  %v122_v18 = vrot.slane %v71_v11, 1  ;;  %v226_v19 = vrot.slane %v71_v11, 2  ;;  %v325_v20 = vrot.slane %v71_v11, 3 }
  0x97   :  { %v424_v21 = vrot.slane %v71_v11, 4  ;;  %v523_v22 = vrot.slane %v71_v11, 5  ;;  %v622_v23 = vrot.slane %v71_v11, 6  ;;  %v721_v24 = vrot.slane %v71_v11, 7 }
  0x98   :  { %v1104_v25 = vsel %vm116_vm0, %v72_v8, %v122_v18  ;;  %v1107_v26 = vsel %vm116_vm0, %v227_v12, %v226_v19  ;;  %v1110_v27 = vsel %vm116_vm0, %v326_v13, %v325_v20 }
  0x99   :  { %v1113_v28 = vsel %vm116_vm0, %v425_v14, %v424_v21  ;;  %v1116_v29 = vsel %vm116_vm0, %v524_v15, %v523_v22  ;;  %v1119_v30 = vsel %vm116_vm0, %v623_v16, %v622_v23  ;;  %v1122_v31 = vsel %vm116_vm0, %v722_v17, %v721_v24 }
  0x9f   :  { %v984_v32 = vpop.eup %983 }
  0xa0   :  { %85 = vrot.lane.b32.xlu1 %v984_v32, %s1045_s0  ;;  %v76_v34 = vadd.f32 1.0, %v984_v32 }
  0xa2   :  { %v78_v35 = vmul.f32 0.5, %v76_v34 }
  0xa3   :  { %v986_v33 = vpop.eup %985 }
  0xa4   :  { %83 = vrot.lane.b32.xlu1 %v986_v33, %s1045_s0  ;;  %v75_v36 = vadd.f32 1.0, %v986_v33  ;;  %v80_v42 = vmul.f32 0.0, %v78_v35 }
  0xa6   :  { %v77_v39 = vmul.f32 0.5, %v75_v36 }
  0xa8   :  { %v79_v45 = vmul.f32 0.0, %v77_v39 }
 0x112   :  { %v86_v37 = vpop.permute.xlu1 %85 }
 0x113   :  { %v90_v38 = vmul.f32 %v86_v37, %v78_v35 }
 0x115   :  { %95 = vrot.lane.b32.xlu0 %v90_v38, %s1046_s1 }
 0x116   :  { %v84_v40 = vpop.permute.xlu1 %83 }
 0x117   :  { %v89_v41 = vmul.f32 %v84_v40, %v77_v39 }
 0x119   :  { %93 = vrot.lane.b32.xlu1 %v89_v41, %s1046_s1 }
 0x187   :  { %v96_v43 = vpop.permute.xlu0 %95 }
 0x188   :  { %v100_v44 = vadd.f32 %v96_v43, %v80_v42 }
 0x18a   :  { %987 = vtanh.f32 %v100_v44  ;;  %v203_v47 = vrot.slane %v100_v44, 7 }
 0x18b   :  { %v94_v46 = vpop.permute.xlu1 %93 }
 0x18c   :  { %v99_v48 = vadd.f32 %v94_v46, %v79_v45 }
 0x18e   :  { %989 = vtanh.f32 %v99_v48  ;;  %v204_v49 = vsel %vm116_vm0, %v203_v47, %v99_v48 }
 0x197   :  { %v988_v54 = vpop.eup %987 }
 0x198   :  { %107 = vrot.lane.b32.xlu0 %v988_v54, %s1045_s0 }
 0x19b   :  { %v990_v56 = vpop.eup %989 }
 0x19c   :  { %105 = vrot.lane.b32.xlu1 %v990_v56, %s1045_s0 }
 0x20a   :  { %v108_v57 = vpop.permute.xlu0 %107 }
 0x20b   :  { %v112_v58 = vmul.f32 %v108_v57, %v78_v35 }
 0x20d   :  { %v115_v60 = vrot.slane %v112_v58, 7 }
 0x20e   :  { %v106_v59 = vpop.permute.xlu1 %105 }
 0x20f   :  { %v111_v61 = vmul.f32 %v106_v59, %v77_v39 }
 0x211   :  { %v117_v62 = vsel %vm116_vm0, %v115_v60, %v111_v61 }
 0x212   :  { %118 = vrot.lane.b32.xlu0 %v117_v62, %s1046_s1 }
 0x284   :  { %v119_v63 = vpop.permute.xlu0 %118 }
 0x285   :  { %905 = vmatmul.mubr.msk.f32.vlgmr.msra.gmra.mxu0 %vm125_vm2, %v119_v63 }
 0x286   :  { %919 = vmatpush3.msra.mxu0 %v1129_v50  ;;  %926 = vmatprep.mubr.msk.f32.mxu0 %vm1048_vm1, %v1047_v51 }
 0x287   :  { %920 = vmatprep.subr.mxu0 %v1047_v51 }
 0x288   :  { %921 = vmatpush3.msra.mxu0 %v1132_v52 }
 0x289   :  { %922 = vmatprep.subr.mxu0 %v1047_v51 }
 0x28a   :  { %923 = vmatpush3.msra.mxu0 %v1139_v53 }
 0x28b   :  { %924 = vmatprep.subr.mxu0 %v1047_v51 }
 0x28c   :  { %925 = vmatpush3.msra.mxu0 %v1145_v55 }
 0x28d   :  { %940 = vmatprep.subr.mxu0 %v1047_v51 }
 0x345   :  { %v194_v0 = vpop.f32.mrf.mxu0 }
 0x346   :  { %v195_v1 = vadd.f32 %v194_v0, %v1104_v25 }
 0x347   :  { %v906_v2 = vpop.f32.mrf.mxu0 }
 0x348   :  { %991 = vtanh.f32 %v195_v1 }
 0x355   :  { %v992_v3 = vpop.eup %991 }
 0x356   :  { %208 = vrot.lane.b32.xlu1 %v992_v3, %s1045_s0  ;;  %v199_v4 = vadd.f32 1.0, %v992_v3 }
 0x358   :  { %v200_v5 = vmul.f32 0.5, %v199_v4 }
 0x35a   :  { %v206_v8 = vmul.f32 %v204_v49, %v200_v5 }
 0x3c8   :  { %v209_v6 = vpop.permute.xlu1 %208 }
 0x3c9   :  { %v211_v7 = vmul.f32 %v209_v6, %v200_v5 }
 0x3cb   :  { %213 = vrot.lane.b32.xlu0 %v211_v7, %s1046_s1 }
 0x43d   :  { %v214_v9 = vpop.permute.xlu0 %213 }
 0x43e   :  { %v216_v10 = vadd.f32 %v214_v9, %v206_v8 }
 0x440   :  { %993 = vtanh.f32 %v216_v10 }
 0x44d   :  { %v994_v11 = vpop.eup %993 }
 0x44e   :  { %219 = vrot.lane.b32.xlu1 %v994_v11, %s1045_s0 }
 0x4c0   :  { %v220_v12 = vpop.permute.xlu1 %219 }
 0x4c1   :  { %v222_v13 = vmul.f32 %v220_v12, %v200_v5 }
 0x4c3   :  { %224 = vrot.lane.b32.xlu0 %v222_v13, %s1046_s1 }
 0x535   :  { %v225_v14 = vpop.permute.xlu0 %224 }
 0x536   :  { %916 = vmatmul.mubr.msk.f32.vlgmr.msra.gmra.mxu1 %vm125_vm2, %v225_v14 }
 0x537   :  { %930 = vmatpush3.msra.mxu1 %v1129_v50  ;;  %937 = vmatprep.mubr.msk.f32.mxu1 %vm1048_vm1, %v1047_v51 }
 0x538   :  { %931 = vmatprep.subr.mxu1 %v1047_v51 }
 0x539   :  { %932 = vmatpush3.msra.mxu1 %v1132_v52 }
 0x53a   :  { %933 = vmatprep.subr.mxu1 %v1047_v51 }
 0x53b   :  { %934 = vmatpush3.msra.mxu1 %v1139_v53 }
 0x53c   :  { %935 = vmatprep.subr.mxu1 %v1047_v51 }
 0x53d   :  { %936 = vmatpush3.msra.mxu1 %v1145_v55 }
 0x53e   :  { %951 = vmatprep.subr.mxu1 %v1047_v51 }
 0x5f6   :  { %v298_v15 = vpop.f32.mrf.mxu1 }
 0x5f7   :  { %v299_v16 = vadd.f32 %v298_v15, %v1107_v26 }
 0x5f8   :  { %v917_v17 = vpop.f32.mrf.mxu1 }
 0x5f9   :  { %995 = vtanh.f32 %v299_v16 }
 0x606   :  { %v996_v18 = vpop.eup %995 }
 0x607   :  { %307 = vrot.lane.b32.xlu1 %v996_v18, %s1045_s0  ;;  %v303_v19 = vadd.f32 1.0, %v996_v18 }
 0x609   :  { %v304_v20 = vmul.f32 0.5, %v303_v19 }
 0x60b   :  { %v305_v23 = vmul.f32 %v304_v20, %v216_v10 }
 0x679   :  { %v308_v21 = vpop.permute.xlu1 %307 }
 0x67a   :  { %v310_v22 = vmul.f32 %v308_v21, %v304_v20 }
 0x67c   :  { %312 = vrot.lane.b32.xlu0 %v310_v22, %s1046_s1 }
 0x6ee   :  { %v313_v24 = vpop.permute.xlu0 %312 }
 0x6ef   :  { %v315_v25 = vadd.f32 %v313_v24, %v305_v23 }
 0x6f1   :  { %997 = vtanh.f32 %v315_v25 }
 0x6fe   :  { %v998_v32 = vpop.eup %997 }
 0x6ff   :  { %318 = vrot.lane.b32.xlu1 %v998_v32, %s1045_s0 }
 0x771   :  { %v319_v33 = vpop.permute.xlu1 %318 }
 0x772   :  { %v321_v26 = vmul.f32 %v319_v33, %v304_v20 }
 0x774   :  { %323 = vrot.lane.b32.xlu0 %v321_v26, %s1046_s1 }
 0x7e6   :  { %v324_v34 = vpop.permute.xlu0 %323 }
 0x7e7   :  { %927 = vmatmul.mubr.msk.f32.vlgmr.msra.gmra.mxu0 %vm125_vm2, %v324_v34 }
 0x7e8   :  { %941 = vmatpush3.msra.mxu0 %v1129_v50  ;;  %948 = vmatprep.mubr.msk.f32.mxu0 %vm1048_vm1, %v1047_v51 }
 0x7e9   :  { %942 = vmatprep.subr.mxu0 %v1047_v51 }
 0x7ea   :  { %943 = vmatpush3.msra.mxu0 %v1132_v52 }
 0x7eb   :  { %944 = vmatprep.subr.mxu0 %v1047_v51 }
 0x7ec   :  { %945 = vmatpush3.msra.mxu0 %v1139_v53 }
 0x7ed   :  { %946 = vmatprep.subr.mxu0 %v1047_v51 }
 0x7ee   :  { %947 = vmatpush3.msra.mxu0 %v1145_v55 }
 0x7ef   :  { %962 = vmatprep.subr.mxu0 %v1047_v51 }
 0x8a7   :  { %v397_v35 = vpop.f32.mrf.mxu0 }
 0x8a8   :  { %v398_v36 = vadd.f32 %v397_v35, %v1110_v27 }
 0x8a9   :  { %v928_v37 = vpop.f32.mrf.mxu0 }
 0x8aa   :  { %999 = vtanh.f32 %v398_v36 }
 0x8b7   :  { %v1000_v38 = vpop.eup %999 }
 0x8b8   :  { %406 = vrot.lane.b32.xlu1 %v1000_v38, %s1045_s0  ;;  %v402_v39 = vadd.f32 1.0, %v1000_v38 }
 0x8ba   :  { %v403_v40 = vmul.f32 0.5, %v402_v39 }
 0x8bc   :  { %v404_v43 = vmul.f32 %v403_v40, %v315_v25 }
 0x92a   :  { %v407_v41 = vpop.permute.xlu1 %406 }
 0x92b   :  { %v409_v42 = vmul.f32 %v407_v41, %v403_v40 }
 0x92d   :  { %411 = vrot.lane.b32.xlu0 %v409_v42, %s1046_s1 }
 0x99f   :  { %v412_v44 = vpop.permute.xlu0 %411 }
 0x9a0   :  { %v414_v45 = vadd.f32 %v412_v44, %v404_v43 }
 0x9a2   :  { %1001 = vtanh.f32 %v414_v45 }
 0x9af   :  { %v1002_v46 = vpop.eup %1001 }
 0x9b0   :  { %417 = vrot.lane.b32.xlu1 %v1002_v46, %s1045_s0 }
 0xa22   :  { %v418_v47 = vpop.permute.xlu1 %417 }
 0xa23   :  { %v420_v27 = vmul.f32 %v418_v47, %v403_v40  ;;  %v859_v40 = vld [vmem:[%s1263_s4] ss:$0 sm:$0xff] }
 0xa25   :  { %422 = vrot.lane.b32.xlu0 %v420_v27, %s1046_s1 }
 0xa97   :  { %v423_v48 = vpop.permute.xlu0 %422 }
 0xa98   :  { %938 = vmatmul.mubr.msk.f32.vlgmr.msra.gmra.mxu1 %vm125_vm2, %v423_v48 }
 0xa99   :  { %952 = vmatpush3.msra.mxu1 %v1129_v50  ;;  %959 = vmatprep.mubr.msk.f32.mxu1 %vm1048_vm1, %v1047_v51 }
 0xa9a   :  { %953 = vmatprep.subr.mxu1 %v1047_v51 }
 0xa9b   :  { %954 = vmatpush3.msra.mxu1 %v1132_v52 }
 0xa9c   :  { %955 = vmatprep.subr.mxu1 %v1047_v51 }
 0xa9d   :  { %956 = vmatpush3.msra.mxu1 %v1139_v53 }
 0xa9e   :  { %957 = vmatprep.subr.mxu1 %v1047_v51 }
 0xa9f   :  { %958 = vmatpush3.msra.mxu1 %v1145_v55 }
 0xb58   :  { %v496_v49 = vpop.f32.mrf.mxu1 }
 0xb59   :  { %v497_v54 = vadd.f32 %v496_v49, %v1113_v28  ;;  %v860_v49 = vld [vmem:[#allocation2] ss:$0 sm:$0xff] }
 0xb5a   :  { %v939_v56 = vpop.f32.mrf.mxu1 }
 0xb5b   :  { %1003 = vtanh.f32 %v497_v54 }
 0xb68   :  { %v1004_v57 = vpop.eup %1003 }
 0xb69   :  { %505 = vrot.lane.b32.xlu1 %v1004_v57, %s1045_s0  ;;  %v501_v58 = vadd.f32 1.0, %v1004_v57 }
 0xb6b   :  { %v502_v59 = vmul.f32 0.5, %v501_v58 }
 0xb6d   :  { %v503_v62 = vmul.f32 %v502_v59, %v414_v45 }
 0xbdb   :  { %v506_v60 = vpop.permute.xlu1 %505 }
 0xbdc   :  { %v508_v61 = vmul.f32 %v506_v60, %v502_v59 }
 0xbde   :  { %510 = vrot.lane.b32.xlu0 %v508_v61, %s1046_s1 }
 0xc50   :  { %v511_v63 = vpop.permute.xlu0 %510 }
 0xc51   :  { %v513_v0 = vadd.f32 %v511_v63, %v503_v62 }
 0xc53   :  { %1005 = vtanh.f32 %v513_v0 }
 0xc60   :  { %v1006_v1 = vpop.eup %1005 }
 0xc61   :  { %516 = vrot.lane.b32.xlu1 %v1006_v1, %s1045_s0 }
 0xcd3   :  { %v517_v2 = vpop.permute.xlu1 %516 }
 0xcd4   :  { %v519_v28 = vmul.f32 %v517_v2, %v502_v59 }
 0xcd6   :  { %521 = vrot.lane.b32.xlu0 %v519_v28, %s1046_s1 }
 0xd48   :  { %v522_v3 = vpop.permute.xlu0 %521 }
 0xd49   :  { %949 = vmatmul.mubr.msk.f32.vlgmr.msra.gmra.mxu0 %vm125_vm2, %v522_v3 }
 0xd4a   :  { %963 = vmatpush3.msra.mxu0 %v1129_v50  ;;  %970 = vmatprep.mubr.msk.f32.mxu0 %vm1048_vm1, %v1047_v51 }
 0xd4b   :  { %964 = vmatprep.subr.mxu0 %v1047_v51 }
 0xd4c   :  { %965 = vmatpush3.msra.mxu0 %v1132_v52 }
 0xd4d   :  { %966 = vmatprep.subr.mxu0 %v1047_v51 }
 0xd4e   :  { %967 = vmatpush3.msra.mxu0 %v1139_v53 }
 0xd4f   :  { %968 = vmatprep.subr.mxu0 %v1047_v51 }
 0xd50   :  { %969 = vmatpush3.msra.mxu0 %v1145_v55 }
 0xe09   :  { %v595_v4 = vpop.f32.mrf.mxu0 }
 0xe0a   :  { %v596_v5 = vadd.f32 %v595_v4, %v1116_v29 }
 0xe0b   :  { %v950_v6 = vpop.f32.mrf.mxu0 }
 0xe0c   :  { %1007 = vtanh.f32 %v596_v5 }
 0xe19   :  { %v1008_v50 = vpop.eup %1007 }
 0xe1a   :  { %604 = vrot.lane.b32.xlu1 %v1008_v50, %s1045_s0  ;;  %v600_v7 = vadd.f32 1.0, %v1008_v50 }
 0xe1c   :  { %v601_v8 = vmul.f32 0.5, %v600_v7 }
 0xe1e   :  { %v602_v10 = vmul.f32 %v601_v8, %v513_v0 }
 0xe8c   :  { %v605_v9 = vpop.permute.xlu1 %604 }
 0xe8d   :  { %v607_v52 = vmul.f32 %v605_v9, %v601_v8 }
 0xe8f   :  { %609 = vrot.lane.b32.xlu0 %v607_v52, %s1046_s1 }
 0xf01   :  { %v610_v53 = vpop.permute.xlu0 %609 }
 0xf02   :  { %v612_v11 = vadd.f32 %v610_v53, %v602_v10 }
 0xf04   :  { %1009 = vtanh.f32 %v612_v11 }
 0xf11   :  { %v1010_v51 = vpop.eup %1009 }
 0xf12   :  { %615 = vrot.lane.b32.xlu1 %v1010_v51, %s1045_s0 }
 0xf84   :  { %v616_v55 = vpop.permute.xlu1 %615 }
 0xf85   :  { %v618_v29 = vmul.f32 %v616_v55, %v601_v8 }
 0xf87   :  { %620 = vrot.lane.b32.xlu0 %v618_v29, %s1046_s1 }
 0xff9   :  { %v621_v12 = vpop.permute.xlu0 %620 }
 0xffa   :  { %960 = vmatmul.mubr.msk.f32.vlgmr.msra.gmra.mxu1 %vm125_vm2, %v621_v12 }
0x10ba   :  { %v694_v13 = vpop.f32.mrf.mxu1 }
0x10bb   :  { %v695_v14 = vadd.f32 %v694_v13, %v1119_v30 }
0x10bc   :  { %v961_v15 = vpop.f32.mrf.mxu1 }
0x10bd   :  { %1011 = vtanh.f32 %v695_v14 }
0x10ca   :  { %v1012_v16 = vpop.eup %1011 }
0x10cb   :  { %703 = vrot.lane.b32.xlu1 %v1012_v16, %s1045_s0  ;;  %v699_v17 = vadd.f32 1.0, %v1012_v16 }
0x10cd   :  { %v700_v18 = vmul.f32 0.5, %v699_v17 }
0x10cf   :  { %v701_v21 = vmul.f32 %v700_v18, %v612_v11 }
0x113d   :  { %v704_v19 = vpop.permute.xlu1 %703 }
0x113e   :  { %v706_v20 = vmul.f32 %v704_v19, %v700_v18 }
0x1140   :  { %708 = vrot.lane.b32.xlu0 %v706_v20, %s1046_s1 }
0x11b2   :  { %v709_v22 = vpop.permute.xlu0 %708 }
0x11b3   :  { %v711_v23 = vadd.f32 %v709_v22, %v701_v21 }
0x11b5   :  { %1013 = vtanh.f32 %v711_v23 }
0x11c2   :  { %v1014_v24 = vpop.eup %1013 }
0x11c3   :  { %714 = vrot.lane.b32.xlu1 %v1014_v24, %s1045_s0 }
0x1235   :  { %v715_v25 = vpop.permute.xlu1 %714 }
0x1236   :  { %v717_v30 = vmul.f32 %v715_v25, %v700_v18 }
0x1238   :  { %719 = vrot.lane.b32.xlu0 %v717_v30, %s1046_s1 }
0x12aa   :  { %v720_v32 = vpop.permute.xlu0 %719 }
0x12ab   :  { %971 = vmatmul.mubr.msk.f32.vlgmr.msra.gmra.mxu0 %vm125_vm2, %v720_v32 }
0x136b   :  { %v793_v33 = vpop.f32.mrf.mxu0 }
0x136c   :  { %v794_v26 = vadd.f32 %v793_v33, %v1122_v31 }
0x136d   :  { %v972_v34 = vpop.f32.mrf.mxu0 }
0x136e   :  { %1015 = vtanh.f32 %v794_v26 }
0x137b   :  { %v1016_v35 = vpop.eup %1015 }
0x137c   :  { %802 = vrot.lane.b32.xlu1 %v1016_v35, %s1045_s0  ;;  %v798_v36 = vadd.f32 1.0, %v1016_v35 }
0x137e   :  { %v799_v37 = vmul.f32 0.5, %v798_v36 }
0x1380   :  { %v800_v41 = vmul.f32 %v799_v37, %v711_v23 }
0x13ee   :  { %v803_v38 = vpop.permute.xlu1 %802 }
0x13ef   :  { %v805_v39 = vmul.f32 %v803_v38, %v799_v37 }
0x13f1   :  { %807 = vrot.lane.b32.xlu0 %v805_v39, %s1046_s1 }
0x13f5   :  { %823 = vrot.lane.b32.xlu0 %v859_v40, %s1049_s13 }
0x1463   :  { %v808_v42 = vpop.permute.xlu0 %807 }
0x1464   :  { %v810_v31 = vadd.f32 %v808_v42, %v800_v41 }
0x1466   :  { %1017 = vtanh.f32 %v810_v31 }
0x1467   :  { %v824_v45 = vpop.permute.xlu0 %823 }
0x1473   :  { %v1018_v43 = vpop.eup %1017 }
0x1474   :  { %813 = vrot.lane.b32.xlu1 %v1018_v43, %s1045_s0 }
0x14e6   :  { %v814_v44 = vpop.permute.xlu1 %813 }
0x14e7   :  { %v816_v46 = vmul.f32 %v814_v44, %v799_v37 }
0x14e9   :  { %v826_v47 = vmul.f32 %v824_v45, %v816_v46 }
0x14eb   :  { %828 = vrot.lane.b32.xlu1 %v826_v47, %s1046_s1 }
0x155d   :  { %v829_v27 = vpop.permute.xlu1 %828 }
0x155e   :  { %v832_v48 = vsel %vm831_vm3, %v829_v27, 0.0 }
0x155f   :  { %833 = vadd.xlane.f32.xlu0 %v832_v48 }
0x15e8   :  { %v834_v54 = vpop.xlane.xlu0 %833 }
0x15e9   :  { %v842_v56 = vadd.f32 %v860_v49, %v834_v54 }
0x15eb   :  { %844 = vst.msk [vmem:[%s1265_s6] sm:$0x3] %vm843_vm4, %v842_v56 }
0x15ec   :  { %849 = vsyncpa [#allocation4], 1 }

</bundles_post_ra>
